<compile_context>
chip_gen: v6e
topology: v6e:2x2x1
jax: 0.10.0
libtpu: 0.0.40
codegen_flags: <defaults>
</compile_context>

<pallas_src>
import functools

import jax
import jax.numpy as jnp
from jax.experimental import pallas as pl
from jax.experimental.pallas import tpu as pltpu


def _make_semantic_kernel(num_planes: int):
    """Kernel: one grid step = one node tile; all planes handled in one body."""

    def kernel(*refs):
        x_refs = refs[:num_planes]                 # each (tn, F)
        w_ref = refs[num_planes]                   # (P, F, C), VMEM-resident
        b_ref = refs[num_planes + 1]               # (P, 1, C), f32
        o_refs = refs[num_planes + 2:]             # each (tn, C), f32
        for i in range(num_planes):
            y = jnp.dot(x_refs[i][...], w_ref[i],
                        preferred_element_type=jnp.float32)   # f32 MXU accumulation
            y = y + b_ref[i].astype(jnp.float32)               # f32 epilogue (v5e-safe)
            o_refs[i][...] = y.astype(o_refs[i].dtype)

    return kernel


def prepare_semantic_decoder_params(params, planes, compute_dtype=jnp.float32):
    """One-time parameter preprocessing (hoisted out of the forward path).

    params: {plane: (W [C, F], b [C])}  (PyTorch nn.Linear convention)
    Returns (w_stack [P, F, C] compute_dtype, b_stack [P, 1, C] f32).
    """
    w_list, b_list = [], []
    for p in planes:
        w, b = params[p]
        w_list.append(w.T.astype(jnp.float32))          # (F, C)
        b_list.append(b[None, :].astype(jnp.float32))   # (1, C)
    w_stack = jnp.stack(w_list).astype(compute_dtype)   # (P, F, C)
    b_stack = jnp.stack(b_list)                          # (P, 1, C), keep f32
    return w_stack, b_stack


def _pick_node_tile(n_nodes: int, requested: int) -> int:
    """Largest tile <= requested that is a multiple of 8, or the full extent."""
    tn = min(requested, n_nodes)
    if tn == n_nodes:
        return tn
    return max(8, (tn // 8) * 8)


@functools.partial(jax.jit, static_argnames=("tile_nodes",))
def _semantic_forward_impl(xs, w_stack, b_stack, *, tile_nodes):
    P = len(xs)
    N, F = xs[0].shape
    C = w_stack.shape[-1]

    tn = _pick_node_tile(N, tile_nodes)
    grid = (pl.cdiv(N, tn),)

    in_specs = [pl.BlockSpec((tn, F), lambda n: (n, 0)) for _ in range(P)]
    in_specs += [
        # Constant index_map -> weights/bias stay resident in VMEM across node tiles.
        pl.BlockSpec((P, F, C), lambda n: (0, 0, 0)),
        pl.BlockSpec((P, 1, C), lambda n: (0, 0, 0)),
    ]
    out_specs = [pl.BlockSpec((tn, C), lambda n: (n, 0)) for _ in range(P)]
    out_shape = tuple(jax.ShapeDtypeStruct((N, C), jnp.float32) for _ in range(P))

    outs = pl.pallas_call(
        _make_semantic_kernel(P),
        out_shape=out_shape,
        grid_spec=pltpu.PrefetchScalarGridSpec(
            num_scalar_prefetch=0,
            grid=grid,
            in_specs=in_specs,
            out_specs=out_specs,
        ),
        compiler_params=pltpu.CompilerParams(
            # Node-tile axis is the parallel axis (shards evenly on v7x's 2 TCs).
            dimension_semantics=("parallel",),
        ),
    )(*xs, w_stack, b_stack)
    return outs


def semantic_decoder_forward(x_dict, prepped_params, planes, *, tile_nodes=512):
    """Pallas implementation of SemanticDecoder.forward.

    x_dict:         {plane: [N, F]}  (all planes share N in this synthetic setup)
    prepped_params: output of prepare_semantic_decoder_params (hoisted preprocessing)
    returns:        {'x_semantic': {plane: [N, C] float32}}
    """
    w_stack, b_stack = prepped_params
    xs = tuple(x_dict[p] for p in planes)
    outs = _semantic_forward_impl(xs, w_stack, b_stack, tile_nodes=tile_nodes)
    return {"x_semantic": {p: outs[i] for i, p in enumerate(planes)}}


def _init_linear_params(key, out_features, in_features):
    """Deterministic init matching nn.Linear's shapes (uniform like PyTorch default)."""
    kw, kb = jax.random.split(key)
    bound = 1.0 / jnp.sqrt(jnp.float32(in_features))
    w = jax.random.uniform(kw, (out_features, in_features), jnp.float32, -bound, bound)
    b = jax.random.uniform(kb, (out_features,), jnp.float32, -bound, bound)
    return w, b


if __name__ == "__main__":
    planes = ("u", "v", "y")
    semantic_classes = ["MIP", "HIP", "shower", "michel", "diffuse"]
    node_features = 32
    num_nodes = 16  # nodes per plane (synthetic, small)

    key = jax.random.PRNGKey(0)
    keys = jax.random.split(key, 2 * len(planes))

    # Inputs: one node-feature tensor per plane.
    x_dict = {
        p: jax.random.normal(keys[i], (num_nodes, node_features), jnp.float32)
        for i, p in enumerate(planes)
    }
    # Parameters: one Linear(node_features, num_classes) per plane.
    params = {
        p: _init_linear_params(keys[len(planes) + i], len(semantic_classes), node_features)
        for i, p in enumerate(planes)
    }

    # --- f32 path (exactness check) ---
    prepped_f32 = prepare_semantic_decoder_params(params, planes, compute_dtype=jnp.float32)
    out_f32 = semantic_decoder_forward(x_dict, prepped_f32, planes)
    jax.block_until_ready(out_f32)
    for p in planes:
        ref = x_dict[p] @ params[p][0].T + params[p][1]
        got = out_f32["x_semantic"][p]
        assert got.shape == (num_nodes, len(semantic_classes))
        assert jnp.allclose(got, ref, atol=1e-5), f"f32 mismatch for plane {p}"

    # --- bf16 path (producer emits bf16 activations; halves HBM read on v6e/v7x) ---
    x_dict_bf16 = {p: x.astype(jnp.bfloat16) for p, x in x_dict.items()}
    prepped_bf16 = prepare_semantic_decoder_params(params, planes, compute_dtype=jnp.bfloat16)
    out_bf16 = semantic_decoder_forward(x_dict_bf16, prepped_bf16, planes)
    jax.block_until_ready(out_bf16)
    for p in planes:
        ref = x_dict[p] @ params[p][0].T + params[p][1]
        got = out_bf16["x_semantic"][p]
        assert got.shape == (num_nodes, len(semantic_classes))
        assert jnp.allclose(got, ref, atol=5e-2, rtol=5e-2), f"bf16 mismatch for plane {p}"

    print("KERNEL_OK")
</pallas_src>

<mosaic_0001>
module attributes {stable_mosaic.version = 11 : i64} {
  func.func @kernel(%arg0: i32, %arg1: memref<16x32xf32, #tpu.memory_space<vmem>>, %arg2: memref<16x32xf32, #tpu.memory_space<vmem>>, %arg3: memref<16x32xf32, #tpu.memory_space<vmem>>, %arg4: memref<3x32x5xf32, #tpu.memory_space<vmem>>, %arg5: memref<3x1x5xf32, #tpu.memory_space<vmem>>, %arg6: memref<16x5xf32, #tpu.memory_space<vmem>>, %arg7: memref<16x5xf32, #tpu.memory_space<vmem>>, %arg8: memref<16x5xf32, #tpu.memory_space<vmem>>) attributes {dimension_semantics = [#tpu.dimension_semantics<parallel>], iteration_bounds = array<i64: 1>, scalar_prefetch = 0 : i64, scratch_operands = 0 : i64, tpu.core_type = #tpu.core_type<tc>, window_params = [{transform_indices = @transform_0, window_bounds = array<i64: 16, 32>}, {transform_indices = @transform_1, window_bounds = array<i64: 16, 32>}, {transform_indices = @transform_2, window_bounds = array<i64: 16, 32>}, {pipeline_mode = #tpu.pipeline_mode<synchronous>, transform_indices = @transform_3, window_bounds = array<i64: 3, 32, 5>}, {pipeline_mode = #tpu.pipeline_mode<synchronous>, transform_indices = @transform_4, window_bounds = array<i64: 3, 1, 5>}, {transform_indices = @transform_5, window_bounds = array<i64: 16, 5>}, {transform_indices = @transform_6, window_bounds = array<i64: 16, 5>}, {transform_indices = @transform_7, window_bounds = array<i64: 16, 5>}]} {
    %c0 = arith.constant 0 : index
    %c0_0 = arith.constant 0 : index
    %0 = vector.load %arg1[%c0, %c0_0] : memref<16x32xf32, #tpu.memory_space<vmem>>, vector<16x32xf32>
    %c0_1 = arith.constant 0 : index
    %c0_2 = arith.constant 0 : index
    %c0_3 = arith.constant 0 : index
    %1 = vector.load %arg4[%c0_1, %c0_2, %c0_3] : memref<3x32x5xf32, #tpu.memory_space<vmem>>, vector<1x32x5xf32>
    %2 = vector.shape_cast %1 : vector<1x32x5xf32> to vector<32x5xf32>
    %cst = arith.constant dense<0.000000e+00> : vector<16x5xf32>
    %3 = tpu.matmul %0, %2, %cst {dimension_numbers = #tpu.dot_dimension_numbers<[1], [0], [0], [1], [0, 0, 1, 1], [], []>} : vector<16x32xf32>, vector<32x5xf32>, vector<16x5xf32> -> vector<16x5xf32>
    %c0_4 = arith.constant 0 : index
    %c0_5 = arith.constant 0 : index
    %c0_6 = arith.constant 0 : index
    %4 = vector.load %arg5[%c0_4, %c0_5, %c0_6] : memref<3x1x5xf32, #tpu.memory_space<vmem>>, vector<1x1x5xf32>
    %5 = vector.shape_cast %4 : vector<1x1x5xf32> to vector<1x5xf32>
    %6 = vector.broadcast %5 : vector<1x5xf32> to vector<16x5xf32>
    %7 = arith.addf %3, %6 : vector<16x5xf32>
    %c0_7 = arith.constant 0 : index
    %c0_8 = arith.constant 0 : index
    %8 = vector.load %arg6[%c0_7, %c0_8] : memref<16x5xf32, #tpu.memory_space<vmem>>, vector<16x5xf32>
    tpu.vector_store %arg6[%c0_7, %c0_8], %7 {strides = array<i32>} : memref<16x5xf32, #tpu.memory_space<vmem>>, vector<16x5xf32>,
    %c0_9 = arith.constant 0 : index
    %c0_10 = arith.constant 0 : index
    %9 = vector.load %arg2[%c0_9, %c0_10] : memref<16x32xf32, #tpu.memory_space<vmem>>, vector<16x32xf32>
    %c1 = arith.constant 1 : index
    %c0_11 = arith.constant 0 : index
    %c0_12 = arith.constant 0 : index
    %10 = vector.load %arg4[%c1, %c0_11, %c0_12] : memref<3x32x5xf32, #tpu.memory_space<vmem>>, vector<1x32x5xf32>
    %11 = vector.shape_cast %10 : vector<1x32x5xf32> to vector<32x5xf32>
    %cst_13 = arith.constant dense<0.000000e+00> : vector<16x5xf32>
    %12 = tpu.matmul %9, %11, %cst_13 {dimension_numbers = #tpu.dot_dimension_numbers<[1], [0], [0], [1], [0, 0, 1, 1], [], []>} : vector<16x32xf32>, vector<32x5xf32>, vector<16x5xf32> -> vector<16x5xf32>
    %c1_14 = arith.constant 1 : index
    %c0_15 = arith.constant 0 : index
    %c0_16 = arith.constant 0 : index
    %13 = vector.load %arg5[%c1_14, %c0_15, %c0_16] : memref<3x1x5xf32, #tpu.memory_space<vmem>>, vector<1x1x5xf32>
    %14 = vector.shape_cast %13 : vector<1x1x5xf32> to vector<1x5xf32>
    %15 = vector.broadcast %14 : vector<1x5xf32> to vector<16x5xf32>
    %16 = arith.addf %12, %15 : vector<16x5xf32>
    %c0_17 = arith.constant 0 : index
    %c0_18 = arith.constant 0 : index
    %17 = vector.load %arg7[%c0_17, %c0_18] : memref<16x5xf32, #tpu.memory_space<vmem>>, vector<16x5xf32>
    tpu.vector_store %arg7[%c0_17, %c0_18], %16 {strides = array<i32>} : memref<16x5xf32, #tpu.memory_space<vmem>>, vector<16x5xf32>,
    %c0_19 = arith.constant 0 : index
    %c0_20 = arith.constant 0 : index
    %18 = vector.load %arg3[%c0_19, %c0_20] : memref<16x32xf32, #tpu.memory_space<vmem>>, vector<16x32xf32>
    %c2 = arith.constant 2 : index
    %c0_21 = arith.constant 0 : index
    %c0_22 = arith.constant 0 : index
    %19 = vector.load %arg4[%c2, %c0_21, %c0_22] : memref<3x32x5xf32, #tpu.memory_space<vmem>>, vector<1x32x5xf32>
    %20 = vector.shape_cast %19 : vector<1x32x5xf32> to vector<32x5xf32>
    %cst_23 = arith.constant dense<0.000000e+00> : vector<16x5xf32>
    %21 = tpu.matmul %18, %20, %cst_23 {dimension_numbers = #tpu.dot_dimension_numbers<[1], [0], [0], [1], [0, 0, 1, 1], [], []>} : vector<16x32xf32>, vector<32x5xf32>, vector<16x5xf32> -> vector<16x5xf32>
    %c2_24 = arith.constant 2 : index
    %c0_25 = arith.constant 0 : index
    %c0_26 = arith.constant 0 : index
    %22 = vector.load %arg5[%c2_24, %c0_25, %c0_26] : memref<3x1x5xf32, #tpu.memory_space<vmem>>, vector<1x1x5xf32>
    %23 = vector.shape_cast %22 : vector<1x1x5xf32> to vector<1x5xf32>
    %24 = vector.broadcast %23 : vector<1x5xf32> to vector<16x5xf32>
    %25 = arith.addf %21, %24 : vector<16x5xf32>
    %c0_27 = arith.constant 0 : index
    %c0_28 = arith.constant 0 : index
    %26 = vector.load %arg8[%c0_27, %c0_28] : memref<16x5xf32, #tpu.memory_space<vmem>>, vector<16x5xf32>
    tpu.vector_store %arg8[%c0_27, %c0_28], %25 {strides = array<i32>} : memref<16x5xf32, #tpu.memory_space<vmem>>, vector<16x5xf32>,
    return
  }
  func.func @transform_0(%arg0: i32) -> (i32, i32) {
    %c0_i32 = arith.constant 0 : i32
    %c0_i32_0 = arith.constant 0 : i32
    return %arg0, %c0_i32 : i32, i32
  }
  func.func @transform_1(%arg0: i32) -> (i32, i32) {
    %c0_i32 = arith.constant 0 : i32
    %c0_i32_0 = arith.constant 0 : i32
    return %arg0, %c0_i32 : i32, i32
  }
  func.func @transform_2(%arg0: i32) -> (i32, i32) {
    %c0_i32 = arith.constant 0 : i32
    %c0_i32_0 = arith.constant 0 : i32
    return %arg0, %c0_i32 : i32, i32
  }
  func.func @transform_3(%arg0: i32) -> (i32, i32, i32) {
    %c0_i32 = arith.constant 0 : i32
    %c0_i32_0 = arith.constant 0 : i32
    %c0_i32_1 = arith.constant 0 : i32
    %c0_i32_2 = arith.constant 0 : i32
    return %c0_i32, %c0_i32_0, %c0_i32_1 : i32, i32, i32
  }
  func.func @transform_4(%arg0: i32) -> (i32, i32, i32) {
    %c0_i32 = arith.constant 0 : i32
    %c0_i32_0 = arith.constant 0 : i32
    %c0_i32_1 = arith.constant 0 : i32
    %c0_i32_2 = arith.constant 0 : i32
    return %c0_i32, %c0_i32_0, %c0_i32_1 : i32, i32, i32
  }
  func.func @transform_5(%arg0: i32) -> (i32, i32) {
    %c0_i32 = arith.constant 0 : i32
    %c0_i32_0 = arith.constant 0 : i32
    return %arg0, %c0_i32 : i32, i32
  }
  func.func @transform_6(%arg0: i32) -> (i32, i32) {
    %c0_i32 = arith.constant 0 : i32
    %c0_i32_0 = arith.constant 0 : i32
    return %arg0, %c0_i32 : i32, i32
  }
  func.func @transform_7(%arg0: i32) -> (i32, i32) {
    %c0_i32 = arith.constant 0 : i32
    %c0_i32_0 = arith.constant 0 : i32
    return %arg0, %c0_i32 : i32, i32
  }
}

</mosaic_0001>

<bundles_post_ra>
// kernel: _semantic_forward_impl.1
= control target key start
LH: loop header
LB: loop body
LE: loop exit
PB: predicated region body
PF: predicated region fallthrough
CT: control target
= control target key end

     0   :  { %vm36_vm0 = vcmask 261120   ;;  %vm118_vm1 = vcmask 39936   ;;  %s532_s3 = inlined_call_operand.vmem [shape: f32[3,32,5], index: 3, kind: input, shape index: {}]   ;;  %s533_s0 = inlined_call_operand.vmem [shape: f32[16,32], index: 0, kind: input, shape index: {}]   ;;  %s534_s1 = inlined_call_operand.vmem [shape: f32[16,32], index: 1, kind: input, shape index: {}]   ;;  %s535_s2 = inlined_call_operand.vmem [shape: f32[16,32], index: 2, kind: input, shape index: {}]   ;;  %s536_s4 = inlined_call_operand.vmem [shape: f32[3,1,5], index: 4, kind: input, shape index: {}]   ;;  %s537_s5 = inlined_call_operand.vmem [shape: f32[16,5], index: 5, kind: output, shape index: {0}]   ;;  %s538_s6 = inlined_call_operand.vmem [shape: f32[16,5], index: 6, kind: output, shape index: {1}]   ;;  %s539_s7 = inlined_call_operand.vmem [shape: f32[16,5], index: 7, kind: output, shape index: {2}]  }
   0x1   :  { %v28_v0 = vld [vmem:[%s532_s3 + $0x18] sm:$0xff]  ;;  %v27_v1 = vld [vmem:[%s532_s3 + $0x10] sm:$0xff]  ;;  %v23_v3 = vld [vmem:[%s533_s0] sm:$0xff] }
   0x2   :  { %366 = vmatprep.subr.mxu0 %v28_v0  ;;  %v335_v2 = vld [vmem:[%s532_s3 + $0x38] sm:$0xff]  ;;  %v26_v4 = vld [vmem:[%s532_s3 + $0x8] sm:$0xff]  ;;  %v334_v5 = vld [vmem:[%s532_s3 + $0x30] sm:$0xff]  ;;  %374 = vmatprep.mubr.msk.f32.mxu0 %vm36_vm0, %v23_v3 }
   0x3   :  { %367 = vmatpush3.msra.mxu0 %v28_v0  ;;  %377 = vmatprep.subr.mxu1 %v335_v2  ;;  %v25_v6 = vld [vmem:[%s532_s3] sm:$0xff]  ;;  %v333_v7 = vld [vmem:[%s532_s3 + $0x28] sm:$0xff]  ;;  %v343_v9 = vld [vmem:[%s532_s3 + $0x58] sm:$0xff] }
   0x4   :  { %368 = vmatprep.subr.mxu0 %v27_v1  ;;  %378 = vmatpush3.msra.mxu1 %v335_v2  ;;  %v24_v8 = vld [vmem:[%s533_s0 + $0x8] sm:$0xff]  ;;  %v332_v10 = vld [vmem:[%s532_s3 + $0x20] sm:$0xff]  ;;  %v342_v11 = vld [vmem:[%s532_s3 + $0x50] sm:$0xff] }
   0x5   :  { %369 = vmatpush3.msra.mxu0 %v27_v1  ;;  %379 = vmatprep.subr.mxu1 %v334_v5  ;;  %v121_v12 = vld [vmem:[%s534_s1] sm:$0xff]  ;;  %v341_v13 = vld [vmem:[%s532_s3 + $0x48] sm:$0xff] }
   0x6   :  { %370 = vmatprep.subr.mxu0 %v26_v4  ;;  %380 = vmatpush3.msra.mxu1 %v334_v5  ;;  %v122_v14 = vld [vmem:[%s534_s1 + $0x8] sm:$0xff]  ;;  %v219_v15 = vld [vmem:[%s535_s2] sm:$0xff] }
   0x7   :  { %371 = vmatpush3.msra.mxu0 %v26_v4  ;;  %381 = vmatprep.subr.mxu1 %v333_v7  ;;  %v340_v16 = vld [vmem:[%s532_s3 + $0x40] sm:$0xff]  ;;  %v220_v17 = vld [vmem:[%s535_s2 + $0x8] sm:$0xff] }
   0x8   :  { %372 = vmatprep.subr.mxu0 %v25_v6  ;;  %382 = vmatpush3.msra.mxu1 %v333_v7  ;;  %v329_v18 = vld [vmem:[%s536_s4] ss:$0 sm:$0xff]  ;;  %v337_v22 = vld [vmem:[%s536_s4 + $0x1] ss:$0 sm:$0xff]  ;;  %v345_v27 = vld [vmem:[%s536_s4 + $0x2] ss:$0 sm:$0xff] }
   0x9   :  { %373 = vmatpush3.msra.mxu0 %v25_v6  ;;  %383 = vmatprep.subr.mxu1 %v332_v10 }
   0xa   :  { %375 = vmatmul.mubr.msk.f32.vlgmr.msra.gmra.mxu0 %vm36_vm0, %v24_v8  ;;  %388 = vmatprep.subr.mxu0 %v343_v9 }
   0xb   :  { %389 = vmatpush3.msra.mxu0 %v343_v9  ;;  %384 = vmatpush3.msra.mxu1 %v332_v10 }
   0xc   :  { %390 = vmatprep.subr.mxu0 %v342_v11  ;;  %385 = vmatprep.mubr.msk.f32.mxu1 %vm36_vm0, %v121_v12 }
   0xd   :  { %391 = vmatpush3.msra.mxu0 %v342_v11  ;;  %386 = vmatmul.mubr.msk.f32.vlgmr.msra.gmra.mxu1 %vm36_vm0, %v122_v14 }
   0xe   :  { %392 = vmatprep.subr.mxu0 %v341_v13  ;;  %396 = vmatprep.mubr.msk.f32.mxu0 %vm36_vm0, %v219_v15 }
   0xf   :  { %393 = vmatpush3.msra.mxu0 %v341_v13 }
  0x10   :  { %394 = vmatprep.subr.mxu0 %v340_v16 }
  0x11   :  { %395 = vmatpush3.msra.mxu0 %v340_v16 }
  0x12   :  { %397 = vmatmul.mubr.msk.f32.vlgmr.msra.gmra.mxu0 %vm36_vm0, %v220_v17 }
  0xca   :  { %v376_v19 = vpop.f32.mrf.mxu0 }
  0xcb   :  { %v115_v20 = vadd.f32 %v376_v19, %v329_v18 }
  0xcc   :  { %v109_v21 = vpop.f32.mrf.mxu0 }
  0xcd   :  { %120 = vst.msk [vmem:[%s537_s5 + $0x8] sm:$0xff] %vm118_vm1, %v115_v20  ;;  %v110_v23 = vadd.f32 %v329_v18, %v109_v21  ;;  %v387_v24 = vpop.f32.mrf.mxu1 }
  0xce   :  { %v214_v25 = vadd.f32 %v387_v24, %v337_v22 }
  0xcf   :  { %119 = vst.msk [vmem:[%s537_s5] sm:$0xff] %vm118_vm1, %v110_v23  ;;  %v208_v26 = vpop.f32.mrf.mxu1 }
  0xd0   :  { %218 = vst.msk [vmem:[%s538_s6 + $0x8] sm:$0xff] %vm118_vm1, %v214_v25  ;;  %v209_v28 = vadd.f32 %v337_v22, %v208_v26 }
  0xd2   :  { %v398_v29 = vpop.f32.mrf.mxu0  ;;  %217 = vst.msk [vmem:[%s538_s6] sm:$0xff] %vm118_vm1, %v209_v28 }
  0xd3   :  { %v312_v30 = vadd.f32 %v398_v29, %v345_v27 }
  0xd4   :  { %v306_v31 = vpop.f32.mrf.mxu0 }
  0xd5   :  { %316 = vst.msk [vmem:[%s539_s7 + $0x8] sm:$0xff] %vm118_vm1, %v312_v30  ;;  %v307_v32 = vadd.f32 %v345_v27, %v306_v31 }
  0xd7   :  { %315 = vst.msk [vmem:[%s539_s7] sm:$0xff] %vm118_vm1, %v307_v32 }

</bundles_post_ra>
